<compile_context>
chip_gen: v7x
topology: tpu7x:2x2x1
jax: 0.10.0
libtpu: 0.0.40
codegen_flags: <defaults>
</compile_context>

<pallas_src>
import functools
import math

import jax
import jax.numpy as jnp
from jax.experimental import pallas as pl
from jax.experimental.pallas import tpu as pltpu

# ----------------------------- hyper-parameters -----------------------------
EMBED_SIZE = 32
HIDDEN_SIZE = 32
VOCAB_SIZE = 40
VOCAB_PAD = 128                  # lane-dense padded logits width
NUM_LAYERS = 2                   # wavefront kernel is specialized to 2 layers
BATCH = 2
BATCH_PAD = 8                    # batch padded to one sublane tile
CAP_LEN = 8                      # caption length; LSTM sees CAP_LEN + 1 steps

_VMEM = pl.BlockSpec(memory_space=pltpu.MemorySpace.VMEM)


# ------------------------- fused LSTM + linear kernel ------------------------
def decoder_fused_kernel(x_ref, slab_ref, out_ref, hbuf_ref, *,
                         hidden, batch_pad, seq_len):
    """Wavefront-fused 2-layer LSTM + linear head.

    x_ref    : ((T+1)*Bp, E) f32  time-major inputs, last time block is padding
    slab_ref : (168, 8H)     f32  packed weights (see prepare_weights layout)
    out_ref  : (T*Bp, 128)   f32  per-step logits (lane-dense padded)
    hbuf_ref : (T*Bp, 2H)    f32  VMEM scratch holding [h0(t+1) | h1(t)] rows

    Gate lane layout of the 8H gate vector: [i0 i1 | f0 f1 | o0 o1 | g0 g1],
    each block H wide.  State layout: h/c = [layer0 | layer1], (Bp, 2H).
    """
    H, Bp, T = hidden, batch_pad, seq_len
    GW = 8 * H
    E = x_ref.shape[1]

    # ---- unpack the single packed weight slab, once, before the loop ----
    w_ih0b = slab_ref[0:E, :]                              # (E, 8H)
    vecs = slab_ref[E:E + 8, :]                            # (8, 8H) row vectors
    w_block = slab_ref[E + 8:E + 8 + 2 * H, :]             # (2H, 8H)
    wlin = slab_ref[E + 8 + 2 * H:E + 8 + 4 * H, 0:VOCAB_PAD]   # (2H, 128)

    b_block = vecs[0:1, :]                                 # (1, 8H)
    scale_b = jnp.broadcast_to(vecs[1:2, :], (Bp, GW))     # hoisted broadcasts
    offset_b = jnp.broadcast_to(vecs[2:3, :], (Bp, GW))
    mask0 = vecs[3:4, 0:2 * H]                             # (1, 2H) prologue mask
    blin = vecs[4:5, 0:VOCAB_PAD]                          # (1, 128)

    # ---- layer-0 input projection + all biases, ALL super-steps, one matmul ----
    xg = jnp.dot(x_ref[...], w_ih0b,
                 preferred_element_type=jnp.float32) + b_block   # ((T+1)*Bp, 8H)

    h = jnp.zeros((Bp, 2 * H), jnp.float32)
    c = jnp.zeros((Bp, 2 * H), jnp.float32)

    # Wavefront: super-step s handles layer-0 @ time s and layer-1 @ time s-1.
    for s in range(T + 1):                                 # static unroll
        gates = xg[s * Bp:(s + 1) * Bp, :] + jnp.dot(
            h, w_block, preferred_element_type=jnp.float32)       # (Bp, 8H)
        # one tanh over the whole gate vreg; sigmoids recovered as 0.5*t + 0.5
        act = jnp.tanh(gates) * scale_b + offset_b
        i_g = act[:, 0:2 * H]
        f_g = act[:, 2 * H:4 * H]
        o_g = act[:, 4 * H:6 * H]
        g_g = act[:, 6 * H:8 * H]
        c = f_g * c + i_g * g_g
        h = o_g * jnp.tanh(c)
        if s == 0:
            # layer-1 half is garbage at the wavefront prologue: keep it zero
            h = h * mask0
            c = c * mask0
        else:
            # store full [h0(s) | h1(s-1)]; linear weight zeroes the h0 half
            hbuf_ref[(s - 1) * Bp:s * Bp, :] = h

    # ---- linear head hoisted: ONE matmul + ONE lane-dense store ----
    out_ref[...] = jnp.dot(hbuf_ref[...], wlin,
                           preferred_element_type=jnp.float32) + blin


# ------------------------------ weight packing -------------------------------
def prepare_weights(params):
    """Pack all decoder weights into one lane-dense (168, 8H) f32 slab.

    Row layout: [0:E)      W_ih0_block   (layer-0 input weights, gate cols)
                [E:E+8)    row vectors   [b_block, scale, offset, mask, blin, 0..]
                [E+8:+2H)  W_block       (h0/h1 rows -> all recurrent/ih1 gate cols)
                [..:+2H)   W_lin_ext     (zero top half, linear_w^T bottom, 128 lanes)
    i/f/o columns & biases are pre-scaled by 0.5 for the tanh-based sigmoid.
    """
    assert NUM_LAYERS == 2, "wavefront kernel is specialized to 2 LSTM layers"
    H, E, GW = HIDDEN_SIZE, EMBED_SIZE, 8 * HIDDEN_SIZE

    def gate_blocks(w):      # (4H, in) PyTorch order [i, f, g, o] -> (in, H) blocks
        return dict(i=w[0:H].T, f=w[H:2 * H].T, g=w[2 * H:3 * H].T, o=w[3 * H:4 * H].T)

    def gate_vec(b):
        return dict(i=b[0:H], f=b[H:2 * H], g=b[2 * H:3 * H], o=b[3 * H:4 * H])

    wih0 = gate_blocks(params["w_ih_0"])       # (E, H) each
    whh0 = gate_blocks(params["w_hh_0"])       # (H, H)
    wih1 = gate_blocks(params["w_ih_1"])       # (H, H)
    whh1 = gate_blocks(params["w_hh_1"])       # (H, H)
    b0 = gate_vec(params["b_ih_0"] + params["b_hh_0"])
    b1 = gate_vec(params["b_ih_1"] + params["b_hh_1"])

    z_eh = jnp.zeros((E, H), jnp.float32)
    z_hh = jnp.zeros((H, H), jnp.float32)

    # lane layout: [i0 i1 | f0 f1 | o0 o1 | g0 g1]
    w_ih0_block = jnp.concatenate(
        [0.5 * wih0["i"], z_eh, 0.5 * wih0["f"], z_eh,
         0.5 * wih0["o"], z_eh, wih0["g"], z_eh], axis=1)                 # (E, 8H)
    w_block_h0 = jnp.concatenate(      # rows multiplied by h0 (= layer-1's input)
        [0.5 * whh0["i"], 0.5 * wih1["i"], 0.5 * whh0["f"], 0.5 * wih1["f"],
         0.5 * whh0["o"], 0.5 * wih1["o"], whh0["g"], wih1["g"]], axis=1)  # (H, 8H)
    w_block_h1 = jnp.concatenate(      # rows multiplied by h1
        [z_hh, 0.5 * whh1["i"], z_hh, 0.5 * whh1["f"],
         z_hh, 0.5 * whh1["o"], z_hh, whh1["g"]], axis=1)                  # (H, 8H)
    w_block = jnp.concatenate([w_block_h0, w_block_h1], axis=0)            # (2H, 8H)

    b_block = jnp.concatenate(
        [0.5 * b0["i"], 0.5 * b1["i"], 0.5 * b0["f"], 0.5 * b1["f"],
         0.5 * b0["o"], 0.5 * b1["o"], b0["g"], b1["g"]])                  # (8H,)
    scale = jnp.concatenate([jnp.full((6 * H,), 0.5, jnp.float32),
                             jnp.ones((2 * H,), jnp.float32)])
    offset = jnp.concatenate([jnp.full((6 * H,), 0.5, jnp.float32),
                              jnp.zeros((2 * H,), jnp.float32)])
    mask = jnp.concatenate([jnp.ones((H,), jnp.float32),
                            jnp.zeros((GW - H,), jnp.float32)])
    blin = jnp.pad(params["linear_b"], (0, GW - VOCAB_SIZE))

    wlin_pad = jnp.pad(params["linear_w"].T,
                       ((0, 0), (0, VOCAB_PAD - VOCAB_SIZE)))              # (H, 128)
    wlin_ext = jnp.concatenate(
        [jnp.zeros((H, VOCAB_PAD), jnp.float32), wlin_pad], axis=0)        # (2H, 128)
    wlin_ext = jnp.pad(wlin_ext, ((0, 0), (0, GW - VOCAB_PAD)))            # (2H, 8H)

    zrow = jnp.zeros((GW,), jnp.float32)
    vec_band = jnp.stack([b_block, scale, offset, mask, blin,
                          zrow, zrow, zrow], axis=0)                       # (8, 8H)

    slab = jnp.concatenate([w_ih0_block, vec_band, w_block, wlin_ext],
                           axis=0).astype(jnp.float32)                     # (168, 8H)
    return slab


# --------------------------------- wrapper ----------------------------------
def packed_row_indices(lengths, total_steps, batch, stride):
    """PyTorch pack_padded_sequence (batch_first, sorted) row order against a
    time-major layout flattened with the given batch stride."""
    idx = []
    for t in range(total_steps):
        for b in range(batch):
            if lengths[b] > t:
                idx.append(t * stride + b)
    return idx


@jax.jit
def _decoder_forward_jit(slab, embed_w, features, captions, gather_idx):
    B, cap_len = captions.shape
    T = cap_len + 1
    Bp = BATCH_PAD

    # embedding lookup + prepend features, go time-major, pad batch & one extra
    # (dummy) time block for the wavefront epilogue, flatten
    emb = jnp.take(embed_w, captions, axis=0)                       # (B, T-1, E)
    x = jnp.concatenate([features[:, None, :].astype(jnp.float32), emb], axis=1)
    x = jnp.transpose(x, (1, 0, 2))                                 # (T, B, E)
    x = jnp.pad(x, ((0, 1), (0, Bp - B), (0, 0)))                   # (T+1, Bp, E)
    x = x.reshape((T + 1) * Bp, EMBED_SIZE)

    logits = pl.pallas_call(
        functools.partial(decoder_fused_kernel, hidden=HIDDEN_SIZE,
                          batch_pad=Bp, seq_len=T),
        out_shape=jax.ShapeDtypeStruct((T * Bp, VOCAB_PAD), jnp.float32),
        in_specs=[_VMEM, _VMEM],
        out_specs=_VMEM,
        scratch_shapes=[pltpu.VMEM((T * Bp, 2 * HIDDEN_SIZE), jnp.float32)],
    )(x, slab)

    # packed-row gather + unpad vocab, fused into the same executable
    return logits[gather_idx, :VOCAB_SIZE]


def decoder_forward(slab, embed_w, features, captions, lengths):
    """Equivalent of DecoderRNN.forward(features, captions, lengths)."""
    B, cap_len = captions.shape
    T = cap_len + 1
    idx = packed_row_indices(lengths, T, B, BATCH_PAD)
    return _decoder_forward_jit(slab, embed_w, features, captions,
                                jnp.array(idx, jnp.int32))


# ------------------------------ pure-JAX reference --------------------------
def decoder_forward_ref(params, features, captions, lengths):
    emb = params["embed_w"][captions]
    x = jnp.concatenate([features[:, None, :], emb], axis=1)        # (B, T, E)
    B, T1, _ = x.shape
    H, L = HIDDEN_SIZE, NUM_LAYERS
    h = jnp.zeros((L, B, H)); c = jnp.zeros((L, B, H))
    outs = []
    for t in range(T1):
        inp = x[:, t]
        hs, cs = [], []
        for l in range(L):
            gates = (inp @ params[f"w_ih_{l}"].T + h[l] @ params[f"w_hh_{l}"].T
                     + params[f"b_ih_{l}"] + params[f"b_hh_{l}"])
            i_g = jax.nn.sigmoid(gates[:, :H])
            f_g = jax.nn.sigmoid(gates[:, H:2 * H])
            g_g = jnp.tanh(gates[:, 2 * H:3 * H])
            o_g = jax.nn.sigmoid(gates[:, 3 * H:])
            c_new = f_g * c[l] + i_g * g_g
            h_new = o_g * jnp.tanh(c_new)
            hs.append(h_new); cs.append(c_new)
            inp = h_new
        h = jnp.stack(hs); c = jnp.stack(cs)
        outs.append(inp)
    hiddens = jnp.stack(outs, axis=0)                               # (T, B, H)
    idx = packed_row_indices(lengths, T1, B, B)
    packed_h = hiddens.reshape(T1 * B, H)[jnp.array(idx, jnp.int32)]
    return packed_h @ params["linear_w"].T + params["linear_b"]


# ---------------------------------- main -------------------------------------
def init_params(key):
    params = {}
    ks = jax.random.split(key, 4 + 4 * NUM_LAYERS)
    params["embed_w"] = jax.random.uniform(
        ks[0], (VOCAB_SIZE, EMBED_SIZE), jnp.float32, -0.1, 0.1)
    params["linear_w"] = jax.random.uniform(
        ks[1], (VOCAB_SIZE, HIDDEN_SIZE), jnp.float32, -0.1, 0.1)
    params["linear_b"] = jnp.zeros((VOCAB_SIZE,), jnp.float32)
    std = 1.0 / math.sqrt(HIDDEN_SIZE)
    for l in range(NUM_LAYERS):
        in_dim = EMBED_SIZE if l == 0 else HIDDEN_SIZE
        params[f"w_ih_{l}"] = jax.random.uniform(
            ks[4 + 4 * l], (4 * HIDDEN_SIZE, in_dim), jnp.float32, -std, std)
        params[f"w_hh_{l}"] = jax.random.uniform(
            ks[5 + 4 * l], (4 * HIDDEN_SIZE, HIDDEN_SIZE), jnp.float32, -std, std)
        params[f"b_ih_{l}"] = jax.random.uniform(
            ks[6 + 4 * l], (4 * HIDDEN_SIZE,), jnp.float32, -std, std)
        params[f"b_hh_{l}"] = jax.random.uniform(
            ks[7 + 4 * l], (4 * HIDDEN_SIZE,), jnp.float32, -std, std)
    return params


if __name__ == "__main__":
    key = jax.random.PRNGKey(0)
    kp, kf, kc = jax.random.split(key, 3)
    params = init_params(kp)

    features = jax.random.normal(kf, (BATCH, EMBED_SIZE), jnp.float32)
    captions = jax.random.randint(kc, (BATCH, CAP_LEN), 0, VOCAB_SIZE, jnp.int32)
    lengths = [CAP_LEN + 1, CAP_LEN - 1]        # sorted decreasing, like PyTorch

    slab = jax.block_until_ready(prepare_weights(params))   # weight prep, once

    out = decoder_forward(slab, params["embed_w"], features, captions, lengths)
    out = jax.block_until_ready(out)

    ref = decoder_forward_ref(params, features, captions, lengths)
    assert out.shape == (sum(lengths), VOCAB_SIZE)
    assert jnp.allclose(out, ref, rtol=1e-4, atol=1e-4), "mismatch vs JAX reference"

    # TODO(synk): DecoderRNN.sample (greedy decode loop) is not implemented here.
    print("KERNEL_OK")
</pallas_src>

<mosaic_0001>
module attributes {stable_mosaic.version = 11 : i64} {
  func.func @decoder_fused_kernel(%arg0: memref<80x32xf32, #tpu.memory_space<vmem>>, %arg1: memref<168x256xf32, #tpu.memory_space<vmem>>, %arg2: memref<72x128xf32, #tpu.memory_space<vmem>>, %arg3: memref<72x64xf32, #tpu.memory_space<vmem>>) attributes {dimension_semantics = [], scalar_prefetch = 0 : i64, scratch_operands = 1 : i64, tpu.core_type = #tpu.core_type<tc>} {
    %c0 = arith.constant 0 : index
    %c0_0 = arith.constant 0 : index
    %0 = vector.load %arg1[%c0, %c0_0] : memref<168x256xf32, #tpu.memory_space<vmem>>, vector<32x256xf32>
    %c32 = arith.constant 32 : index
    %c0_1 = arith.constant 0 : index
    %1 = vector.load %arg1[%c32, %c0_1] : memref<168x256xf32, #tpu.memory_space<vmem>>, vector<8x256xf32>
    %c40 = arith.constant 40 : index
    %c0_2 = arith.constant 0 : index
    %2 = vector.load %arg1[%c40, %c0_2] : memref<168x256xf32, #tpu.memory_space<vmem>>, vector<64x256xf32>
    %c104 = arith.constant 104 : index
    %c0_3 = arith.constant 0 : index
    %3 = vector.load %arg1[%c104, %c0_3] : memref<168x256xf32, #tpu.memory_space<vmem>>, vector<64x128xf32>
    %4 = vector.extract_strided_slice %1 {offsets = [0, 0], sizes = [1, 256], strides = [1, 1]} : vector<8x256xf32> to vector<1x256xf32>
    %5 = vector.extract_strided_slice %1 {offsets = [1, 0], sizes = [1, 256], strides = [1, 1]} : vector<8x256xf32> to vector<1x256xf32>
    %6 = vector.shape_cast %5 : vector<1x256xf32> to vector<1x256xf32>
    %7 = vector.broadcast %6 : vector<1x256xf32> to vector<8x256xf32>
    %8 = vector.extract_strided_slice %1 {offsets = [2, 0], sizes = [1, 256], strides = [1, 1]} : vector<8x256xf32> to vector<1x256xf32>
    %9 = vector.shape_cast %8 : vector<1x256xf32> to vector<1x256xf32>
    %10 = vector.broadcast %9 : vector<1x256xf32> to vector<8x256xf32>
    %11 = vector.extract_strided_slice %1 {offsets = [3, 0], sizes = [1, 64], strides = [1, 1]} : vector<8x256xf32> to vector<1x64xf32>
    %12 = vector.extract_strided_slice %1 {offsets = [4, 0], sizes = [1, 128], strides = [1, 1]} : vector<8x256xf32> to vector<1x128xf32>
    %c0_4 = arith.constant 0 : index
    %c0_5 = arith.constant 0 : index
    %13 = vector.load %arg0[%c0_4, %c0_5] : memref<80x32xf32, #tpu.memory_space<vmem>>, vector<80x32xf32>
    %cst = arith.constant dense<0.000000e+00> : vector<80x256xf32>
    %14 = tpu.matmul %13, %0, %cst {dimension_numbers = #tpu.dot_dimension_numbers<[1], [0], [0], [1], [0, 0, 1, 1], [], []>} : vector<80x32xf32>, vector<32x256xf32>, vector<80x256xf32> -> vector<80x256xf32>
    %15 = vector.broadcast %4 : vector<1x256xf32> to vector<80x256xf32>
    %16 = arith.addf %14, %15 : vector<80x256xf32>
    %cst_6 = arith.constant 0.000000e+00 : f32
    %17 = vector.broadcast %cst_6 : f32 to vector<8x64xf32>
    %cst_7 = arith.constant 0.000000e+00 : f32
    %18 = vector.broadcast %cst_7 : f32 to vector<8x64xf32>
    %19 = vector.extract_strided_slice %16 {offsets = [0, 0], sizes = [8, 256], strides = [1, 1]} : vector<80x256xf32> to vector<8x256xf32>
    %cst_8 = arith.constant dense<0.000000e+00> : vector<8x256xf32>
    %20 = tpu.matmul %17, %2, %cst_8 {dimension_numbers = #tpu.dot_dimension_numbers<[1], [0], [0], [1], [0, 0, 1, 1], [], []>} : vector<8x64xf32>, vector<64x256xf32>, vector<8x256xf32> -> vector<8x256xf32>
    %21 = arith.addf %19, %20 : vector<8x256xf32>
    %22 = math.tanh %21 : vector<8x256xf32>
    %23 = arith.mulf %22, %7 : vector<8x256xf32>
    %24 = arith.addf %23, %10 : vector<8x256xf32>
    %25 = vector.extract_strided_slice %24 {offsets = [0, 0], sizes = [8, 64], strides = [1, 1]} : vector<8x256xf32> to vector<8x64xf32>
    %26 = vector.extract_strided_slice %24 {offsets = [0, 64], sizes = [8, 64], strides = [1, 1]} : vector<8x256xf32> to vector<8x64xf32>
    %27 = vector.extract_strided_slice %24 {offsets = [0, 128], sizes = [8, 64], strides = [1, 1]} : vector<8x256xf32> to vector<8x64xf32>
    %28 = vector.extract_strided_slice %24 {offsets = [0, 192], sizes = [8, 64], strides = [1, 1]} : vector<8x256xf32> to vector<8x64xf32>
    %29 = arith.mulf %26, %18 : vector<8x64xf32>
    %30 = arith.mulf %25, %28 : vector<8x64xf32>
    %31 = arith.addf %29, %30 : vector<8x64xf32>
    %32 = math.tanh %31 : vector<8x64xf32>
    %33 = arith.mulf %27, %32 : vector<8x64xf32>
    %34 = vector.broadcast %11 : vector<1x64xf32> to vector<8x64xf32>
    %35 = arith.mulf %33, %34 : vector<8x64xf32>
    %36 = vector.broadcast %11 : vector<1x64xf32> to vector<8x64xf32>
    %37 = arith.mulf %31, %36 : vector<8x64xf32>
    %38 = vector.extract_strided_slice %16 {offsets = [8, 0], sizes = [8, 256], strides = [1, 1]} : vector<80x256xf32> to vector<8x256xf32>
    %cst_9 = arith.constant dense<0.000000e+00> : vector<8x256xf32>
    %39 = tpu.matmul %35, %2, %cst_9 {dimension_numbers = #tpu.dot_dimension_numbers<[1], [0], [0], [1], [0, 0, 1, 1], [], []>} : vector<8x64xf32>, vector<64x256xf32>, vector<8x256xf32> -> vector<8x256xf32>
    %40 = arith.addf %38, %39 : vector<8x256xf32>
    %41 = math.tanh %40 : vector<8x256xf32>
    %42 = arith.mulf %41, %7 : vector<8x256xf32>
    %43 = arith.addf %42, %10 : vector<8x256xf32>
    %44 = vector.extract_strided_slice %43 {offsets = [0, 0], sizes = [8, 64], strides = [1, 1]} : vector<8x256xf32> to vector<8x64xf32>
    %45 = vector.extract_strided_slice %43 {offsets = [0, 64], sizes = [8, 64], strides = [1, 1]} : vector<8x256xf32> to vector<8x64xf32>
    %46 = vector.extract_strided_slice %43 {offsets = [0, 128], sizes = [8, 64], strides = [1, 1]} : vector<8x256xf32> to vector<8x64xf32>
    %47 = vector.extract_strided_slice %43 {offsets = [0, 192], sizes = [8, 64], strides = [1, 1]} : vector<8x256xf32> to vector<8x64xf32>
    %48 = arith.mulf %45, %37 : vector<8x64xf32>
    %49 = arith.mulf %44, %47 : vector<8x64xf32>
    %50 = arith.addf %48, %49 : vector<8x64xf32>
    %51 = math.tanh %50 : vector<8x64xf32>
    %52 = arith.mulf %46, %51 : vector<8x64xf32>
    %c0_10 = arith.constant 0 : index
    %c0_11 = arith.constant 0 : index
    %53 = vector.load %arg3[%c0_10, %c0_11] : memref<72x64xf32, #tpu.memory_space<vmem>>, vector<8x64xf32>
    tpu.vector_store %arg3[%c0_10, %c0_11], %52 {strides = array<i32>} : memref<72x64xf32, #tpu.memory_space<vmem>>, vector<8x64xf32>,
    %54 = vector.extract_strided_slice %16 {offsets = [16, 0], sizes = [8, 256], strides = [1, 1]} : vector<80x256xf32> to vector<8x256xf32>
    %cst_12 = arith.constant dense<0.000000e+00> : vector<8x256xf32>
    %55 = tpu.matmul %52, %2, %cst_12 {dimension_numbers = #tpu.dot_dimension_numbers<[1], [0], [0], [1], [0, 0, 1, 1], [], []>} : vector<8x64xf32>, vector<64x256xf32>, vector<8x256xf32> -> vector<8x256xf32>
    %56 = arith.addf %54, %55 : vector<8x256xf32>
    %57 = math.tanh %56 : vector<8x256xf32>
    %58 = arith.mulf %57, %7 : vector<8x256xf32>
    %59 = arith.addf %58, %10 : vector<8x256xf32>
    %60 = vector.extract_strided_slice %59 {offsets = [0, 0], sizes = [8, 64], strides = [1, 1]} : vector<8x256xf32> to vector<8x64xf32>
    %61 = vector.extract_strided_slice %59 {offsets = [0, 64], sizes = [8, 64], strides = [1, 1]} : vector<8x256xf32> to vector<8x64xf32>
    %62 = vector.extract_strided_slice %59 {offsets = [0, 128], sizes = [8, 64], strides = [1, 1]} : vector<8x256xf32> to vector<8x64xf32>
    %63 = vector.extract_strided_slice %59 {offsets = [0, 192], sizes = [8, 64], strides = [1, 1]} : vector<8x256xf32> to vector<8x64xf32>
    %64 = arith.mulf %61, %50 : vector<8x64xf32>
    %65 = arith.mulf %60, %63 : vector<8x64xf32>
    %66 = arith.addf %64, %65 : vector<8x64xf32>
    %67 = math.tanh %66 : vector<8x64xf32>
    %68 = arith.mulf %62, %67 : vector<8x64xf32>
    %c8 = arith.constant 8 : index
    %c0_13 = arith.constant 0 : index
    %69 = vector.load %arg3[%c8, %c0_13] : memref<72x64xf32, #tpu.memory_space<vmem>>, vector<8x64xf32>
    tpu.vector_store %arg3[%c8, %c0_13], %68 {strides = array<i32>} : memref<72x64xf32, #tpu.memory_space<vmem>>, vector<8x64xf32>,
    %70 = vector.extract_strided_slice %16 {offsets = [24, 0], sizes = [8, 256], strides = [1, 1]} : vector<80x256xf32> to vector<8x256xf32>
    %cst_14 = arith.constant dense<0.000000e+00> : vector<8x256xf32>
    %71 = tpu.matmul %68, %2, %cst_14 {dimension_numbers = #tpu.dot_dimension_numbers<[1], [0], [0], [1], [0, 0, 1, 1], [], []>} : vector<8x64xf32>, vector<64x256xf32>, vector<8x256xf32> -> vector<8x256xf32>
    %72 = arith.addf %70, %71 : vector<8x256xf32>
    %73 = math.tanh %72 : vector<8x256xf32>
    %74 = arith.mulf %73, %7 : vector<8x256xf32>
    %75 = arith.addf %74, %10 : vector<8x256xf32>
    %76 = vector.extract_strided_slice %75 {offsets = [0, 0], sizes = [8, 64], strides = [1, 1]} : vector<8x256xf32> to vector<8x64xf32>
    %77 = vector.extract_strided_slice %75 {offsets = [0, 64], sizes = [8, 64], strides = [1, 1]} : vector<8x256xf32> to vector<8x64xf32>
    %78 = vector.extract_strided_slice %75 {offsets = [0, 128], sizes = [8, 64], strides = [1, 1]} : vector<8x256xf32> to vector<8x64xf32>
    %79 = vector.extract_strided_slice %75 {offsets = [0, 192], sizes = [8, 64], strides = [1, 1]} : vector<8x256xf32> to vector<8x64xf32>
    %80 = arith.mulf %77, %66 : vector<8x64xf32>
    %81 = arith.mulf %76, %79 : vector<8x64xf32>
    %82 = arith.addf %80, %81 : vector<8x64xf32>
    %83 = math.tanh %82 : vector<8x64xf32>
    %84 = arith.mulf %78, %83 : vector<8x64xf32>
    %c16 = arith.constant 16 : index
    %c0_15 = arith.constant 0 : index
    %85 = vector.load %arg3[%c16, %c0_15] : memref<72x64xf32, #tpu.memory_space<vmem>>, vector<8x64xf32>
    tpu.vector_store %arg3[%c16, %c0_15], %84 {strides = array<i32>} : memref<72x64xf32, #tpu.memory_space<vmem>>, vector<8x64xf32>,
    %86 = vector.extract_strided_slice %16 {offsets = [32, 0], sizes = [8, 256], strides = [1, 1]} : vector<80x256xf32> to vector<8x256xf32>
    %cst_16 = arith.constant dense<0.000000e+00> : vector<8x256xf32>
    %87 = tpu.matmul %84, %2, %cst_16 {dimension_numbers = #tpu.dot_dimension_numbers<[1], [0], [0], [1], [0, 0, 1, 1], [], []>} : vector<8x64xf32>, vector<64x256xf32>, vector<8x256xf32> -> vector<8x256xf32>
    %88 = arith.addf %86, %87 : vector<8x256xf32>
    %89 = math.tanh %88 : vector<8x256xf32>
    %90 = arith.mulf %89, %7 : vector<8x256xf32>
    %91 = arith.addf %90, %10 : vector<8x256xf32>
    %92 = vector.extract_strided_slice %91 {offsets = [0, 0], sizes = [8, 64], strides = [1, 1]} : vector<8x256xf32> to vector<8x64xf32>
    %93 = vector.extract_strided_slice %91 {offsets = [0, 64], sizes = [8, 64], strides = [1, 1]} : vector<8x256xf32> to vector<8x64xf32>
    %94 = vector.extract_strided_slice %91 {offsets = [0, 128], sizes = [8, 64], strides = [1, 1]} : vector<8x256xf32> to vector<8x64xf32>
    %95 = vector.extract_strided_slice %91 {offsets = [0, 192], sizes = [8, 64], strides = [1, 1]} : vector<8x256xf32> to vector<8x64xf32>
    %96 = arith.mulf %93, %82 : vector<8x64xf32>
    %97 = arith.mulf %92, %95 : vector<8x64xf32>
    %98 = arith.addf %96, %97 : vector<8x64xf32>
    %99 = math.tanh %98 : vector<8x64xf32>
    %100 = arith.mulf %94, %99 : vector<8x64xf32>
    %c24 = arith.constant 24 : index
    %c0_17 = arith.constant 0 : index
    %101 = vector.load %arg3[%c24, %c0_17] : memref<72x64xf32, #tpu.memory_space<vmem>>, vector<8x64xf32>
    tpu.vector_store %arg3[%c24, %c0_17], %100 {strides = array<i32>} : memref<72x64xf32, #tpu.memory_space<vmem>>, vector<8x64xf32>,
    %102 = vector.extract_strided_slice %16 {offsets = [40, 0], sizes = [8, 256], strides = [1, 1]} : vector<80x256xf32> to vector<8x256xf32>
    %cst_18 = arith.constant dense<0.000000e+00> : vector<8x256xf32>
    %103 = tpu.matmul %100, %2, %cst_18 {dimension_numbers = #tpu.dot_dimension_numbers<[1], [0], [0], [1], [0, 0, 1, 1], [], []>} : vector<8x64xf32>, vector<64x256xf32>, vector<8x256xf32> -> vector<8x256xf32>
    %104 = arith.addf %102, %103 : vector<8x256xf32>
    %105 = math.tanh %104 : vector<8x256xf32>
    %106 = arith.mulf %105, %7 : vector<8x256xf32>
    %107 = arith.addf %106, %10 : vector<8x256xf32>
    %108 = vector.extract_strided_slice %107 {offsets = [0, 0], sizes = [8, 64], strides = [1, 1]} : vector<8x256xf32> to vector<8x64xf32>
    %109 = vector.extract_strided_slice %107 {offsets = [0, 64], sizes = [8, 64], strides = [1, 1]} : vector<8x256xf32> to vector<8x64xf32>
    %110 = vector.extract_strided_slice %107 {offsets = [0, 128], sizes = [8, 64], strides = [1, 1]} : vector<8x256xf32> to vector<8x64xf32>
    %111 = vector.extract_strided_slice %107 {offsets = [0, 192], sizes = [8, 64], strides = [1, 1]} : vector<8x256xf32> to vector<8x64xf32>
    %112 = arith.mulf %109, %98 : vector<8x64xf32>
    %113 = arith.mulf %108, %111 : vector<8x64xf32>
    %114 = arith.addf %112, %113 : vector<8x64xf32>
    %115 = math.tanh %114 : vector<8x64xf32>
    %116 = arith.mulf %110, %115 : vector<8x64xf32>
    %c32_19 = arith.constant 32 : index
    %c0_20 = arith.constant 0 : index
    %117 = vector.load %arg3[%c32_19, %c0_20] : memref<72x64xf32, #tpu.memory_space<vmem>>, vector<8x64xf32>
    tpu.vector_store %arg3[%c32_19, %c0_20], %116 {strides = array<i32>} : memref<72x64xf32, #tpu.memory_space<vmem>>, vector<8x64xf32>,
    %118 = vector.extract_strided_slice %16 {offsets = [48, 0], sizes = [8, 256], strides = [1, 1]} : vector<80x256xf32> to vector<8x256xf32>
    %cst_21 = arith.constant dense<0.000000e+00> : vector<8x256xf32>
    %119 = tpu.matmul %116, %2, %cst_21 {dimension_numbers = #tpu.dot_dimension_numbers<[1], [0], [0], [1], [0, 0, 1, 1], [], []>} : vector<8x64xf32>, vector<64x256xf32>, vector<8x256xf32> -> vector<8x256xf32>
    %120 = arith.addf %118, %119 : vector<8x256xf32>
    %121 = math.tanh %120 : vector<8x256xf32>
    %122 = arith.mulf %121, %7 : vector<8x256xf32>
    %123 = arith.addf %122, %10 : vector<8x256xf32>
    %124 = vector.extract_strided_slice %123 {offsets = [0, 0], sizes = [8, 64], strides = [1, 1]} : vector<8x256xf32> to vector<8x64xf32>
    %125 = vector.extract_strided_slice %123 {offsets = [0, 64], sizes = [8, 64], strides = [1, 1]} : vector<8x256xf32> to vector<8x64xf32>
    %126 = vector.extract_strided_slice %123 {offsets = [0, 128], sizes = [8, 64], strides = [1, 1]} : vector<8x256xf32> to vector<8x64xf32>
    %127 = vector.extract_strided_slice %123 {offsets = [0, 192], sizes = [8, 64], strides = [1, 1]} : vector<8x256xf32> to vector<8x64xf32>
    %128 = arith.mulf %125, %114 : vector<8x64xf32>
    %129 = arith.mulf %124, %127 : vector<8x64xf32>
    %130 = arith.addf %128, %129 : vector<8x64xf32>
    %131 = math.tanh %130 : vector<8x64xf32>
    %132 = arith.mulf %126, %131 : vector<8x64xf32>
    %c40_22 = arith.constant 40 : index
    %c0_23 = arith.constant 0 : index
    %133 = vector.load %arg3[%c40_22, %c0_23] : memref<72x64xf32, #tpu.memory_space<vmem>>, vector<8x64xf32>
    tpu.vector_store %arg3[%c40_22, %c0_23], %132 {strides = array<i32>} : memref<72x64xf32, #tpu.memory_space<vmem>>, vector<8x64xf32>,
    %134 = vector.extract_strided_slice %16 {offsets = [56, 0], sizes = [8, 256], strides = [1, 1]} : vector<80x256xf32> to vector<8x256xf32>
    %cst_24 = arith.constant dense<0.000000e+00> : vector<8x256xf32>
    %135 = tpu.matmul %132, %2, %cst_24 {dimension_numbers = #tpu.dot_dimension_numbers<[1], [0], [0], [1], [0, 0, 1, 1], [], []>} : vector<8x64xf32>, vector<64x256xf32>, vector<8x256xf32> -> vector<8x256xf32>
    %136 = arith.addf %134, %135 : vector<8x256xf32>
    %137 = math.tanh %136 : vector<8x256xf32>
    %138 = arith.mulf %137, %7 : vector<8x256xf32>
    %139 = arith.addf %138, %10 : vector<8x256xf32>
    %140 = vector.extract_strided_slice %139 {offsets = [0, 0], sizes = [8, 64], strides = [1, 1]} : vector<8x256xf32> to vector<8x64xf32>
    %141 = vector.extract_strided_slice %139 {offsets = [0, 64], sizes = [8, 64], strides = [1, 1]} : vector<8x256xf32> to vector<8x64xf32>
    %142 = vector.extract_strided_slice %139 {offsets = [0, 128], sizes = [8, 64], strides = [1, 1]} : vector<8x256xf32> to vector<8x64xf32>
    %143 = vector.extract_strided_slice %139 {offsets = [0, 192], sizes = [8, 64], strides = [1, 1]} : vector<8x256xf32> to vector<8x64xf32>
    %144 = arith.mulf %141, %130 : vector<8x64xf32>
    %145 = arith.mulf %140, %143 : vector<8x64xf32>
    %146 = arith.addf %144, %145 : vector<8x64xf32>
    %147 = math.tanh %146 : vector<8x64xf32>
    %148 = arith.mulf %142, %147 : vector<8x64xf32>
    %c48 = arith.constant 48 : index
    %c0_25 = arith.constant 0 : index
    %149 = vector.load %arg3[%c48, %c0_25] : memref<72x64xf32, #tpu.memory_space<vmem>>, vector<8x64xf32>
    tpu.vector_store %arg3[%c48, %c0_25], %148 {strides = array<i32>} : memref<72x64xf32, #tpu.memory_space<vmem>>, vector<8x64xf32>,
    %150 = vector.extract_strided_slice %16 {offsets = [64, 0], sizes = [8, 256], strides = [1, 1]} : vector<80x256xf32> to vector<8x256xf32>
    %cst_26 = arith.constant dense<0.000000e+00> : vector<8x256xf32>
    %151 = tpu.matmul %148, %2, %cst_26 {dimension_numbers = #tpu.dot_dimension_numbers<[1], [0], [0], [1], [0, 0, 1, 1], [], []>} : vector<8x64xf32>, vector<64x256xf32>, vector<8x256xf32> -> vector<8x256xf32>
    %152 = arith.addf %150, %151 : vector<8x256xf32>
    %153 = math.tanh %152 : vector<8x256xf32>
    %154 = arith.mulf %153, %7 : vector<8x256xf32>
    %155 = arith.addf %154, %10 : vector<8x256xf32>
    %156 = vector.extract_strided_slice %155 {offsets = [0, 0], sizes = [8, 64], strides = [1, 1]} : vector<8x256xf32> to vector<8x64xf32>
    %157 = vector.extract_strided_slice %155 {offsets = [0, 64], sizes = [8, 64], strides = [1, 1]} : vector<8x256xf32> to vector<8x64xf32>
    %158 = vector.extract_strided_slice %155 {offsets = [0, 128], sizes = [8, 64], strides = [1, 1]} : vector<8x256xf32> to vector<8x64xf32>
    %159 = vector.extract_strided_slice %155 {offsets = [0, 192], sizes = [8, 64], strides = [1, 1]} : vector<8x256xf32> to vector<8x64xf32>
    %160 = arith.mulf %157, %146 : vector<8x64xf32>
    %161 = arith.mulf %156, %159 : vector<8x64xf32>
    %162 = arith.addf %160, %161 : vector<8x64xf32>
    %163 = math.tanh %162 : vector<8x64xf32>
    %164 = arith.mulf %158, %163 : vector<8x64xf32>
    %c56 = arith.constant 56 : index
    %c0_27 = arith.constant 0 : index
    %165 = vector.load %arg3[%c56, %c0_27] : memref<72x64xf32, #tpu.memory_space<vmem>>, vector<8x64xf32>
    tpu.vector_store %arg3[%c56, %c0_27], %164 {strides = array<i32>} : memref<72x64xf32, #tpu.memory_space<vmem>>, vector<8x64xf32>,
    %166 = vector.extract_strided_slice %16 {offsets = [72, 0], sizes = [8, 256], strides = [1, 1]} : vector<80x256xf32> to vector<8x256xf32>
    %cst_28 = arith.constant dense<0.000000e+00> : vector<8x256xf32>
    %167 = tpu.matmul %164, %2, %cst_28 {dimension_numbers = #tpu.dot_dimension_numbers<[1], [0], [0], [1], [0, 0, 1, 1], [], []>} : vector<8x64xf32>, vector<64x256xf32>, vector<8x256xf32> -> vector<8x256xf32>
    %168 = arith.addf %166, %167 : vector<8x256xf32>
    %169 = math.tanh %168 : vector<8x256xf32>
    %170 = arith.mulf %169, %7 : vector<8x256xf32>
    %171 = arith.addf %170, %10 : vector<8x256xf32>
    %172 = vector.extract_strided_slice %171 {offsets = [0, 0], sizes = [8, 64], strides = [1, 1]} : vector<8x256xf32> to vector<8x64xf32>
    %173 = vector.extract_strided_slice %171 {offsets = [0, 64], sizes = [8, 64], strides = [1, 1]} : vector<8x256xf32> to vector<8x64xf32>
    %174 = vector.extract_strided_slice %171 {offsets = [0, 128], sizes = [8, 64], strides = [1, 1]} : vector<8x256xf32> to vector<8x64xf32>
    %175 = vector.extract_strided_slice %171 {offsets = [0, 192], sizes = [8, 64], strides = [1, 1]} : vector<8x256xf32> to vector<8x64xf32>
    %176 = arith.mulf %173, %162 : vector<8x64xf32>
    %177 = arith.mulf %172, %175 : vector<8x64xf32>
    %178 = arith.addf %176, %177 : vector<8x64xf32>
    %179 = math.tanh %178 : vector<8x64xf32>
    %180 = arith.mulf %174, %179 : vector<8x64xf32>
    %c64 = arith.constant 64 : index
    %c0_29 = arith.constant 0 : index
    %181 = vector.load %arg3[%c64, %c0_29] : memref<72x64xf32, #tpu.memory_space<vmem>>, vector<8x64xf32>
    tpu.vector_store %arg3[%c64, %c0_29], %180 {strides = array<i32>} : memref<72x64xf32, #tpu.memory_space<vmem>>, vector<8x64xf32>,
    %c0_30 = arith.constant 0 : index
    %c0_31 = arith.constant 0 : index
    %182 = vector.load %arg3[%c0_30, %c0_31] : memref<72x64xf32, #tpu.memory_space<vmem>>, vector<72x64xf32>
    %cst_32 = arith.constant dense<0.000000e+00> : vector<72x128xf32>
    %183 = tpu.matmul %182, %3, %cst_32 {dimension_numbers = #tpu.dot_dimension_numbers<[1], [0], [0], [1], [0, 0, 1, 1], [], []>} : vector<72x64xf32>, vector<64x128xf32>, vector<72x128xf32> -> vector<72x128xf32>
    %184 = vector.broadcast %12 : vector<1x128xf32> to vector<72x128xf32>
    %185 = arith.addf %183, %184 : vector<72x128xf32>
    %c0_33 = arith.constant 0 : index
    %c0_34 = arith.constant 0 : index
    %186 = vector.load %arg2[%c0_33, %c0_34] : memref<72x128xf32, #tpu.memory_space<vmem>>, vector<72x128xf32>
    tpu.vector_store %arg2[%c0_33, %c0_34], %185 {strides = array<i32>} : memref<72x128xf32, #tpu.memory_space<vmem>>, vector<72x128xf32>,
    return
  }
}

</mosaic_0001>

<bundles_post_ra>
// kernel: custom-call.2
= control target key start
LH: loop header
LB: loop body
LE: loop exit
PB: predicated region body
PF: predicated region fallthrough
CT: control target
= control target key end

     0   :  { %s6_s0 = inlined_call_operand.hbm [shape: f32[16,40], index: 0, kind: output, shape index: {}]  }

// kernel: _decoder_forward_jit.1
= control target key start
LH: loop header
LB: loop body
LE: loop exit
PB: predicated region body
PF: predicated region fallthrough
CT: control target
= control target key end

     0   :  { %v1780_v3 = vmov 0.0   ;;  %vm79_vm0 = vcmask 261120   ;;  %v45_v57 = vlaneseq  ;;  %s1781_s22 = smov 64   ;;  %vm235_vm1 = vcmask 523264   ;;  %s2306_s1 = inlined_call_operand.vmem [shape: f32[168,256], index: 1, kind: input, shape index: {}]   ;;  %s2307_s0 = inlined_call_operand.vmem [shape: f32[80,32], index: 0, kind: input, shape index: {}]   ;;  %s2308_s2 = inlined_call_operand.vmem [shape: f32[72,128], index: 2, kind: output, shape index: {}]  }
   0x1   :  { %v12_v0 = vld [vmem:[%s2306_s1 + $0x8] sm:$0xff]  ;;  %v14_v1 = vld [vmem:[%s2306_s1 + $0x18] sm:$0xff]  ;;  %v11_v2 = vld [vmem:[%s2306_s1] sm:$0xff]  ;;  %174 = vmatprep.mubr.f32.mxu1 %v1780_v3  ;;  %512 = vmatprep.mubr.f32.mxu0 %v1780_v3  ;;  %vm1783_vm2 = vmmov 0  }
   0x2   :  { %v1496_v4 = vpack.c.bf16 %v14_v1, %v12_v0  ;;  %v13_v5 = vld [vmem:[%s2306_s1 + $0x10] sm:$0xff]  ;;  %v16_v6 = vld [vmem:[%s2306_s1 + $0x28] sm:$0xff]  ;;  %v18_v7 = vld [vmem:[%s2306_s1 + $0x38] sm:$0xff]  ;;  %v1990_v60 = vshrl.u32 %v45_v57, 7 }
   0x3   :  { %v1498_v8 = vpack.c.bf16 %v13_v5, %v11_v2  ;;  %v1500_v9 = vpack.c.bf16 %v18_v7, %v16_v6  ;;  %v15_v10 = vld [vmem:[%s2306_s1 + $0x20] sm:$0xff]  ;;  %v17_v11 = vld [vmem:[%s2306_s1 + $0x30] sm:$0xff]  ;;  %v22_v12 = vld [vmem:[%s2306_s1 + $0x58] sm:$0xff] }
   0x4   :  { %1497 = vmatprep.subr.bf16.mxu1 %v1496_v4  ;;  %v24_v13 = vld [vmem:[%s2306_s1 + $0x68] sm:$0xff]  ;;  %v21_v14 = vld [vmem:[%s2306_s1 + $0x50] sm:$0xff]  ;;  %v1502_v15 = vpack.c.bf16 %v17_v11, %v15_v10  ;;  %v23_v17 = vld [vmem:[%s2306_s1 + $0x60] sm:$0xff]  ;;  %v73_v63 = vsub.s32 0, %v1990_v60 }
   0x5   :  { %1499 = vmatpush1.bf16.msra.mxu1 %v1498_v8  ;;  %v1834_v16 = vpack.c.bf16 %v24_v13, %v22_v12  ;;  %v1839_v18 = vpack.c.bf16 %v23_v17, %v21_v14  ;;  %v26_v19 = vld [vmem:[%s2306_s1 + $0x78] sm:$0xff]  ;;  %v28_v20 = vld [vmem:[%s2306_s1 + $0x88] sm:$0xff]  ;;  %v25_v22 = vld [vmem:[%s2306_s1 + $0x70] sm:$0xff]  ;;  %v47_v8 = vsub.s32 1, %v1990_v60 }
   0x6   :  { %1501 = vmatprep.subr.bf16.mxu1 %v1500_v9  ;;  %v1847_v21 = vpack.c.bf16 %v28_v20, %v26_v19  ;;  %v27_v23 = vld [vmem:[%s2306_s1 + $0x80] sm:$0xff]  ;;  %v30_v25 = vld [vmem:[%s2306_s1 + $0x98] sm:$0xff]  ;;  %v32_v26 = vld [vmem:[%s2306_s1 + $0xa8] sm:$0xff]  ;;  %v55_v9 = vsub.s32 2, %v1990_v60 }
   0x7   :  { %1537 = vmatprep.subr.bf16.mxu0 %v1834_v16  ;;  %v61_v24 = vld [vmem:[%s2307_s0] sm:$0xff]  ;;  %v1868_v27 = vpack.c.bf16 %v27_v23, %v25_v22  ;;  %v29_v28 = vld [vmem:[%s2306_s1 + $0x90] sm:$0xff]  ;;  %v1877_v30 = vpack.c.bf16 %v32_v26, %v30_v25  ;;  %v62_v31 = vld [vmem:[%s2307_s0 + $0x8] sm:$0xff]  ;;  %v337_v26 = vsub.s32 3, %v1990_v60 }
   0x8   :  { %1539 = vmatpush1.bf16.msra.mxu0 %v1839_v18  ;;  %v31_v29 = vld [vmem:[%s2306_s1 + $0xa0] sm:$0xff]  ;;  %v34_v32 = vld [vmem:[%s2306_s1 + $0xb8] sm:$0xff]  ;;  %v36_v33 = vld [vmem:[%s2306_s1 + $0xc8] sm:$0xff] }
   0x9   :  { %1503 = vmatpush1.bf16.msra.mxu1 %v1502_v15  ;;  %1541 = vmatprep.subr.bf16.mxu0 %v1847_v21  ;;  %v1892_v34 = vpack.c.bf16 %v31_v29, %v29_v28  ;;  %v33_v35 = vld [vmem:[%s2306_s1 + $0xb0] sm:$0xff]  ;;  %v35_v36 = vld [vmem:[%s2306_s1 + $0xc0] sm:$0xff]  ;;  %v1902_v37 = vpack.c.bf16 %v36_v33, %v34_v32  ;;  %v64_v40 = vld [vmem:[%s2307_s0 + $0x18] sm:$0xff] }
   0xa   :  { %1505 = vmatprep.subr.bf16.mxu1 %v1834_v16  ;;  %v63_v38 = vld [vmem:[%s2307_s0 + $0x10] sm:$0xff]  ;;  %v1911_v39 = vpack.c.bf16 %v35_v36, %v33_v35  ;;  %v65_v41 = vld [vmem:[%s2307_s0 + $0x20] sm:$0xff]  ;;  %v66_v42 = vld [vmem:[%s2307_s0 + $0x28] sm:$0xff] }
   0xb   :  { %v67_v43 = vld [vmem:[%s2307_s0 + $0x30] sm:$0xff]  ;;  %v68_v44 = vld [vmem:[%s2307_s0 + $0x38] sm:$0xff]  ;;  %v69_v45 = vld [vmem:[%s2307_s0 + $0x40] sm:$0xff] }
   0xc   :  { %1408 = vmatmul.mubr.msk.f32.vlgmr.msra.gmra.mrb[0].mxu1 %vm79_vm0, %v61_v24  ;;  %1543 = vmatpush1.bf16.msra.mxu0 %v1868_v27  ;;  %v70_v46 = vld [vmem:[%s2307_s0 + $0x48] sm:$0xff]  ;;  %v2019_v15 = vld [vmem:[%s2306_s1 + $0x40] sm:$0xff] }
   0xd   :  { %1507 = vmatpush1.bf16.msra.mxu1 %v1839_v18  ;;  %180 = vmatprep.mubr.f32.mxu1 %v1780_v3  ;;  %v20_v1 = vld [vmem:[%s2306_s1 + $0x48] sm:$0xff]  ;;  %v2022_v17 = vrot.slane %v2019_v15, %v73_v63  ;;  %v2026_v20 = vrot.slane %v2019_v15, %v47_v8  ;;  %v2029_v23 = vrot.slane %v2019_v15, %v55_v9 }
   0xe   :  { %1509 = vmatprep.subr.bf16.mxu1 %v1847_v21  ;;  %1545 = vmatprep.subr.bf16.mxu0 %v1877_v30  ;;  %v2004_v4 = vrot.slane %v20_v1, %v73_v63  ;;  %v2009_v10 = vrot.slane %v20_v1, %v47_v8  ;;  %v2011_v11 = vrot.slane %v20_v1, %v55_v9  ;;  %v37_v9 = vld [vmem:[%s2306_s1 + $0xd0] sm:$0xff] }
  0x10   :  { %1409 = vmatmul.mubr.msk.f32.gmra.mrb[2].mxu1 %vm79_vm0, %v62_v31  ;;  %1547 = vmatpush1.bf16.msra.mxu0 %v1892_v34  ;;  %v338_v31 = vrot.slane %v2019_v15, %v337_v26 }
  0x11   :  { %186 = vmatprep.mubr.f32.mxu1 %v1780_v3  ;;  %1511 = vmatpush1.bf16.msra.mxu1 %v1868_v27 }
  0x12   :  { %1513 = vmatprep.subr.bf16.mxu1 %v1877_v30  ;;  %1549 = vmatprep.subr.bf16.mxu0 %v1902_v37 }
  0x14   :  { %1410 = vmatmul.mubr.msk.f32.gmra.mrb[4].mxu1 %vm79_vm0, %v63_v38  ;;  %1551 = vmatpush1.bf16.msra.mxu0 %v1911_v39 }
  0x15   :  { %192 = vmatprep.mubr.f32.mxu1 %v1780_v3  ;;  %1515 = vmatpush1.bf16.msra.mxu1 %v1892_v34 }
  0x16   :  { %1517 = vmatprep.subr.bf16.mxu1 %v1902_v37  ;;  %1553 = vmatprep.subr.bf16.mxu0 %v1834_v16 }
  0x18   :  { %1411 = vmatmul.mubr.msk.f32.gmra.mrb[6].mxu1 %vm79_vm0, %v64_v40 }
  0x19   :  { %198 = vmatprep.mubr.f32.mxu1 %v1780_v3  ;;  %1519 = vmatpush1.bf16.msra.mxu1 %v1911_v39 }
  0x1a   :  { %1521 = vmatprep.subr.bf16.mxu1 %v1834_v16 }
  0x1c   :  { %1412 = vmatmul.mubr.msk.f32.gmra.mrb[8].mxu1 %vm79_vm0, %v65_v41 }
  0x1d   :  { %204 = vmatprep.mubr.f32.mxu1 %v1780_v3 }
  0x20   :  { %1413 = vmatmul.mubr.msk.f32.gmra.mrb[10].mxu1 %vm79_vm0, %v66_v42 }
  0x21   :  { %210 = vmatprep.mubr.f32.mxu1 %v1780_v3 }
  0x24   :  { %1414 = vmatmul.mubr.msk.f32.gmra.mrb[12].mxu1 %vm79_vm0, %v67_v43 }
  0x25   :  { %216 = vmatprep.mubr.f32.mxu1 %v1780_v3 }
  0x28   :  { %1415 = vmatmul.mubr.msk.f32.gmra.mrb[14].mxu1 %vm79_vm0, %v68_v44 }
  0x29   :  { %222 = vmatprep.mubr.f32.mxu1 %v1780_v3 }
  0x2c   :  { %1416 = vmatmul.mubr.msk.f32.gmra.mrb[16].mxu1 %vm79_vm0, %v69_v45 }
  0x2d   :  { %228 = vmatprep.mubr.f32.mxu1 %v1780_v3 }
  0x30   :  { %1417 = vmatmul.mubr.msk.f32.gmra.mrb[18].mxu1 %vm79_vm0, %v70_v46 }
  0x31   :  { %303 = vmatprep.mubr.f32.mxu1 %v1780_v3 }
  0x34   :  { %304 = vmatmul.mubr.f32.vlgmr.msra.gmra.mrb[0].mxu1 %v1780_v3 }
  0x35   :  { %1523 = vmatpush1.bf16.msra.mxu1 %v1839_v18  ;;  %412 = vmatprep.mubr.f32.mxu1 %v1780_v3 }
  0x36   :  { %1525 = vmatprep.subr.bf16.mxu1 %v1847_v21 }
  0x39   :  { %1527 = vmatpush1.bf16.msra.mxu1 %v1868_v27 }
  0x3a   :  { %1529 = vmatprep.subr.bf16.mxu1 %v1877_v30 }
  0x3d   :  { %1531 = vmatpush1.bf16.msra.mxu1 %v1892_v34 }
  0x3e   :  { %1533 = vmatprep.subr.bf16.mxu1 %v1902_v37 }
  0x41   :  { %1535 = vmatpush1.bf16.msra.mxu1 %v1911_v39 }
  0xe7   :  { %v1966_v47 = vpop.f32.mrb[4].mxu1 }
  0xe8   :  { %v1968_v48 = vpop.f32.mrb[5].mxu1 }
  0xeb   :  { %v1970_v49 = vpop.f32.mrb[6].mxu1 }
  0xec   :  { %v1972_v50 = vpop.f32.mrb[7].mxu1 }
  0xef   :  { %v1974_v51 = vpop.f32.mrb[8].mxu1 }
  0xf0   :  { %v1976_v52 = vpop.f32.mrb[9].mxu1 }
  0xf3   :  { %v1978_v53 = vpop.f32.mrb[10].mxu1 }
  0xf4   :  { %v1980_v54 = vpop.f32.mrb[11].mxu1 }
  0xf7   :  { %v1982_v55 = vpop.f32.mrb[12].mxu1 }
  0xf8   :  { %v1984_v56 = vpop.f32.mrb[13].mxu1 }
  0xfb   :  { %v1986_v58 = vpop.f32.mrb[14].mxu1 }
  0xfc   :  { %v1988_v59 = vpop.f32.mrb[15].mxu1 }
  0xff   :  { %v1992_v61 = vpop.f32.mrb[16].mxu1 }
 0x100   :  { %v1994_v62 = vpop.f32.mrb[17].mxu1 }
 0x103   :  { %v1997_v0 = vpop.f32.mrb[18].mxu1 }
 0x104   :  { %v2002_v2 = vpop.f32.mrb[19].mxu1 }
 0x107   :  { %v305_v5 = vpop.f32.mrb[0].mxu1 }
 0x108   :  { %v307_v6 = vpop.f32.mrb[1].mxu1  ;;  %v1676_v19 = vadd.f32 %v305_v5, %v2022_v17 }
 0x109   :  { %v1677_v7 = vadd.f32 %v307_v6, %v2004_v4 }
 0x10b   :  { %1720 = vtanh.f32 %v1677_v7 }
 0x10c   :  { %1722 = vtanh.f32 %v1676_v19 }
 0x115   :  { %v1721_v12 = vpop.eup %1720 }
 0x116   :  { %v315_v13 = vmul.f32 %v1721_v12, %v2009_v10  ;;  %v1723_v22 = vpop.eup %1722  ;;  %v38_v12 = vld [vmem:[%s2306_s1 + $0xe0] sm:$0xff] }
 0x117   :  { %v314_v24 = vmul.f32 %v1723_v22, %v2026_v20  ;;  %v1665_v19 = vpack.c.bf16 %v38_v12, %v37_v9  ;;  %v40_v22 = vld [vmem:[%s2306_s1 + $0x100] sm:$0xff] }
 0x118   :  { %v317_v14 = vadd.f32 %v315_v13, %v2011_v11  ;;  %v39_v13 = vld [vmem:[%s2306_s1 + $0xf0] sm:$0xff] }
 0x119   :  { %v316_v25 = vadd.f32 %v314_v24, %v2029_v23  ;;  %v1668_v24 = vpack.c.bf16 %v40_v22, %v39_v13 }
 0x11a   :  { %320 = vrot.lane.b32.xlu0 %v317_v14, %s1781_s22 }
 0x11b   :  { %v318_v32 = vmul.f32 0.0, %v316_v25 }
 0x18c   :  { %v321_v28 = vpop.permute.xlu0 %320 }
 0x18d   :  { %v323_v29 = vmul.f32 %v321_v28, %v316_v25 }
 0x18f   :  { %325 = vrot.lane.b32.xlu0 %v323_v29, %s1781_s22 }
 0x193   :  { %341 = vrot.lane.b32.xlu0 %v338_v31, %s1781_s22 }
 0x201   :  { %v326_v33 = vpop.permute.xlu0 %325 }
 0x202   :  { %v328_v35 = vadd.f32 %v326_v33, %v318_v32  ;;  %v41_v32 = vld [vmem:[%s2306_s1 + $0x110] sm:$0xff]  ;;  %v42_v33 = vld [vmem:[%s2306_s1 + $0x120] sm:$0xff] }
 0x204   :  { %1724 = vtanh.f32 %v328_v35 }
 0x205   :  { %v342_v25 = vpop.permute.xlu0 %341 }
 0x206   :  { %v344_v26 = vmul.f32 %v342_v25, %v328_v35  ;;  %v44_v35 = vld [vmem:[%s2306_s1 + $0x140] sm:$0xff] }
 0x20e   :  { %v1725_v36 = vpop.eup %1724 }
 0x20f   :  { %331 = vrot.lane.b32.xlu1 %v1725_v36, %s1781_s22  ;;  %v1671_v36 = vpack.c.bf16 %v42_v33, %v41_v32  ;;  %v195_v33 = vadd.f32 %v1970_v49, %v2022_v17 }
 0x281   :  { %v332_v38 = vpop.permute.xlu1 %331 }
 0x282   :  { %v334_v40 = vmul.f32 %v332_v38, %v317_v14  ;;  %v1782_v14 = vmov 0.0|0.0   ;;  %v43_v38 = vld [vmem:[%s2306_s1 + $0x130] sm:$0xff] }
 0x283   :  { %1664 = vmatprep.subr.bf16.mxu1 %v1782_v14 }
 0x284   :  { %v339_v41 = vmul.f32 %v338_v31, %v334_v40  ;;  %v1674_v40 = vpack.c.bf16 %v44_v35, %v43_v38 }
 0x286   :  { %1418 = vmatmul.mubr.msk.f32.vlgmr.msra.gmra.mrb[2].mxu1 %vm235_vm1, %v339_v41 }
 0x287   :  { %1666 = vmatpush3.bf16.msra.mxu1 %v1665_v19  ;;  %1469 = vmatprep.mubr.msk.f32.mxu1 %vm1783_vm2, %v1780_v3 }
 0x288   :  { %1667 = vmatprep.subr.bf16.mxu1 %v1782_v14 }
 0x28b   :  { %1669 = vmatpush3.bf16.msra.mxu1 %v1668_v24 }
 0x28c   :  { %1670 = vmatprep.subr.bf16.mxu1 %v1782_v14 }
 0x28f   :  { %1672 = vmatpush3.bf16.msra.mxu1 %v1671_v36  ;;  %v197_v36 = vadd.f32 %v1972_v50, %v2004_v4 }
 0x290   :  { %1673 = vmatprep.subr.bf16.mxu1 %v1782_v14 }
 0x293   :  { %1675 = vmatpush3.bf16.msra.mxu1 %v1674_v40 }
 0x359   :  { %v414_v42 = vpop.f32.mrb[2].mxu1 }
 0x35a   :  { %v416_v43 = vpop.f32.mrb[3].mxu1  ;;  %v1678_v63 = vadd.f32 %v414_v42, %v2022_v17 }
 0x35b   :  { %v1679_v44 = vadd.f32 %v416_v43, %v2004_v4 }
 0x35d   :  { %1726 = vtanh.f32 %v1679_v44 }
 0x35e   :  { %1728 = vtanh.f32 %v1678_v63 }
 0x367   :  { %v1727_v45 = vpop.eup %1726 }
 0x368   :  { %v424_v46 = vmul.f32 %v1727_v45, %v2009_v10  ;;  %v1729_v1 = vpop.eup %1728  ;;  %v189_v45 = vadd.f32 %v1966_v47, %v2022_v17 }
 0x369   :  { %v423_v5 = vmul.f32 %v1729_v1, %v2026_v20 }
 0x36a   :  { %v426_v57 = vadd.f32 %v424_v46, %v2011_v11  ;;  %v191_v46 = vadd.f32 %v1968_v48, %v2004_v4 }
 0x36b   :  { %v425_v6 = vadd.f32 %v423_v5, %v2029_v23  ;;  %v1256_v5 = vsub.s32 4, %v1990_v60 }
 0x36c   :  { %429 = vrot.lane.b32.xlu1 %v426_v57, %s1781_s22 }
 0x36d   :  { %v427_v28 = vmul.f32 %v425_v6, %v344_v26 }
 0x3de   :  { %v430_v7 = vpop.permute.xlu1 %429 }
 0x3df   :  { %v432_v8 = vmul.f32 %v430_v7, %v425_v6  ;;  %v2094_v7 = vrot.slane %v2019_v15, %v1256_v5 }
 0x3e1   :  { %434 = vrot.lane.b32.xlu1 %v432_v8, %s1781_s22 }
 0x453   :  { %v435_v29 = vpop.permute.xlu1 %434 }
 0x454   :  { %v437_v31 = vadd.f32 %v435_v29, %v427_v28 }
 0x456   :  { %1730 = vtanh.f32 %v437_v31 }
 0x460   :  { %v1731_v41 = vpop.eup %1730 }
 0x461   :  { %440 = vrot.lane.b32.xlu0 %v1731_v41, %s1781_s22 }
 0x4d3   :  { %v441_v42 = vpop.permute.xlu0 %440 }
 0x4d4   :  { %v443_v43 = vmul.f32 %v441_v42, %v426_v57 }
 0x4d6   :  { %444 = vst.msk [vmem:[#allocation2] sm:$0xff] %vm235_vm1, %v443_v43  ;;  %1419 = vmatmul.mubr.msk.f32.vlgmr.msra.gmra.mrb[0].mxu0 %vm235_vm1, %v443_v43 }
 0x4d7   :  { %1555 = vmatpush1.bf16.msra.mxu0 %v1839_v18  ;;  %612 = vmatprep.mubr.f32.mxu0 %v1780_v3 }
 0x4d8   :  { %1557 = vmatprep.subr.bf16.mxu0 %v1847_v21 }
 0x4db   :  { %1559 = vmatpush1.bf16.msra.mxu0 %v1868_v27 }
 0x4dc   :  { %1561 = vmatprep.subr.bf16.mxu0 %v1877_v30 }
 0x4dd   :  { %v1245_v44 = vld [vmem:[#allocation2] sm:$0xff] }
 0x4de   :  { %1470 = vmatmul.mubr.msk.f32.vlgmr.msra.gmra.mrb[20].mxu1 %vm235_vm1, %v1245_v44 }
 0x4df   :  { %1563 = vmatpush1.bf16.msra.mxu0 %v1892_v34  ;;  %1472 = vmatprep.mubr.msk.f32.mxu1 %vm1783_vm2, %v1780_v3 }
 0x4e0   :  { %1565 = vmatprep.subr.bf16.mxu0 %v1902_v37 }
 0x4e3   :  { %1567 = vmatpush1.bf16.msra.mxu0 %v1911_v39 }
 0x4e4   :  { %1569 = vmatprep.subr.bf16.mxu0 %v1834_v16 }
 0x5a9   :  { %v514_v57 = vpop.f32.mrb[0].mxu0 }
 0x5aa   :  { %v519_v63 = vadd.f32 %v514_v57, %v189_v45  ;;  %v516_v1 = vpop.f32.mrb[1].mxu0 }
 0x5ab   :  { %v520_v6 = vadd.f32 %v516_v1, %v191_v46 }
 0x5ad   :  { %1732 = vtanh.f32 %v520_v6 }
 0x5ae   :  { %1734 = vtanh.f32 %v519_v63 }
 0x5b1   :  { %v1351_v8 = vpop.f32.mrb[20].mxu1 }
 0x5b2   :  { %v1352_v9 = vadd.f32 %v1351_v8, %v2094_v7  ;;  %v1471_v12 = vpop.f32.mrb[21].mxu1 }
 0x5b4   :  { %1395 = vst [vmem:[%s2308_s2] sm:$0xff] %v1352_v9 }
 0x5b7   :  { %v1733_v47 = vpop.eup %1732 }
 0x5b8   :  { %v524_v48 = vmul.f32 %v1733_v47, %v2009_v10  ;;  %v1735_v60 = vpop.eup %1734 }
 0x5b9   :  { %v523_v15 = vmul.f32 %v1735_v60, %v2026_v20  ;;  %v201_v60 = vadd.f32 %v1974_v51, %v2022_v17 }
 0x5ba   :  { %v526_v13 = vadd.f32 %v524_v48, %v2011_v11 }
 0x5bb   :  { %v525_v14 = vadd.f32 %v523_v15, %v2029_v23  ;;  %v203_v15 = vadd.f32 %v1976_v52, %v2004_v4 }
 0x5bc   :  { %529 = vrot.lane.b32.xlu1 %v526_v13, %s1781_s22 }
 0x5bd   :  { %v527_v24 = vmul.f32 %v525_v14, %v437_v31 }
 0x62e   :  { %v530_v19 = vpop.permute.xlu1 %529 }
 0x62f   :  { %v532_v22 = vmul.f32 %v530_v19, %v525_v14 }
 0x631   :  { %534 = vrot.lane.b32.xlu0 %v532_v22, %s1781_s22 }
 0x6a3   :  { %v535_v25 = vpop.permute.xlu0 %534 }
 0x6a4   :  { %v537_v26 = vadd.f32 %v535_v25, %v527_v24 }
 0x6a6   :  { %1736 = vtanh.f32 %v537_v26 }
 0x6b0   :  { %v1737_v28 = vpop.eup %1736 }
 0x6b1   :  { %540 = vrot.lane.b32.xlu1 %v1737_v28, %s1781_s22 }
 0x723   :  { %v541_v29 = vpop.permute.xlu1 %540 }
 0x724   :  { %v543_v32 = vmul.f32 %v541_v29, %v526_v13 }
 0x726   :  { %544 = vst.msk [vmem:[#allocation2 + $0x8] sm:$0xff] %vm235_vm1, %v543_v32  ;;  %1420 = vmatmul.mubr.msk.f32.vlgmr.msra.gmra.mrb[2].mxu0 %vm235_vm1, %v543_v32 }
 0x727   :  { %1571 = vmatpush1.bf16.msra.mxu0 %v1839_v18  ;;  %712 = vmatprep.mubr.f32.mxu0 %v1780_v3 }
 0x728   :  { %1573 = vmatprep.subr.bf16.mxu0 %v1847_v21 }
 0x72b   :  { %1575 = vmatpush1.bf16.msra.mxu0 %v1868_v27 }
 0x72c   :  { %1577 = vmatprep.subr.bf16.mxu0 %v1877_v30 }
 0x72d   :  { %v1246_v31 = vld [vmem:[#allocation2 + $0x8] sm:$0xff] }
 0x72e   :  { %1473 = vmatmul.mubr.msk.f32.gmra.mrb[22].mxu1 %vm235_vm1, %v1246_v31 }
 0x72f   :  { %1579 = vmatpush1.bf16.msra.mxu0 %v1892_v34  ;;  %1475 = vmatprep.mubr.msk.f32.mxu1 %vm1783_vm2, %v1780_v3 }
 0x730   :  { %1581 = vmatprep.subr.bf16.mxu0 %v1902_v37 }
 0x733   :  { %1583 = vmatpush1.bf16.msra.mxu0 %v1911_v39 }
 0x734   :  { %1585 = vmatprep.subr.bf16.mxu0 %v1834_v16 }
 0x7f9   :  { %v614_v38 = vpop.f32.mrb[2].mxu0 }
 0x7fa   :  { %v619_v35 = vadd.f32 %v614_v38, %v195_v33  ;;  %v616_v40 = vpop.f32.mrb[3].mxu0 }
 0x7fb   :  { %v620_v41 = vadd.f32 %v616_v40, %v197_v36 }
 0x7fd   :  { %1738 = vtanh.f32 %v620_v41 }
 0x7fe   :  { %1740 = vtanh.f32 %v619_v35 }
 0x801   :  { %v1356_v42 = vpop.f32.mrb[22].mxu1 }
 0x802   :  { %v1357_v43 = vadd.f32 %v1356_v42, %v2094_v7  ;;  %v1474_v44 = vpop.f32.mrb[23].mxu1 }
 0x804   :  { %1396 = vst [vmem:[%s2308_s2 + $0x8] sm:$0xff] %v1357_v43 }
 0x807   :  { %v1739_v45 = vpop.eup %1738 }
 0x808   :  { %v624_v46 = vmul.f32 %v1739_v45, %v2009_v10  ;;  %v1741_v50 = vpop.eup %1740 }
 0x809   :  { %v623_v57 = vmul.f32 %v1741_v50, %v2026_v20 }
 0x80a   :  { %v626_v49 = vadd.f32 %v624_v46, %v2011_v11  ;;  %v207_v46 = vadd.f32 %v1978_v53, %v2022_v17 }
 0x80b   :  { %v625_v63 = vadd.f32 %v623_v57, %v2029_v23 }
 0x80c   :  { %629 = vrot.lane.b32.xlu0 %v626_v49, %s1781_s22 }
 0x80d   :  { %v627_v6 = vmul.f32 %v625_v63, %v537_v26 }
 0x87e   :  { %v630_v1 = vpop.permute.xlu0 %629 }
 0x87f   :  { %v632_v5 = vmul.f32 %v630_v1, %v625_v63 }
 0x881   :  { %634 = vrot.lane.b32.xlu1 %v632_v5, %s1781_s22 }
 0x8f3   :  { %v635_v8 = vpop.permute.xlu1 %634 }
 0x8f4   :  { %v637_v9 = vadd.f32 %v635_v8, %v627_v6 }
 0x8f6   :  { %1742 = vtanh.f32 %v637_v9 }
 0x900   :  { %v1743_v12 = vpop.eup %1742 }
 0x901   :  { %640 = vrot.lane.b32.xlu0 %v1743_v12, %s1781_s22 }
 0x973   :  { %v641_v47 = vpop.permute.xlu0 %640 }
 0x974   :  { %v643_v48 = vmul.f32 %v641_v47, %v626_v49  ;;  %v209_v49 = vadd.f32 %v1980_v54, %v2004_v4 }
 0x976   :  { %644 = vst.msk [vmem:[#allocation2 + $0x10] sm:$0xff] %vm235_vm1, %v643_v48  ;;  %1421 = vmatmul.mubr.msk.f32.vlgmr.msra.gmra.mrb[4].mxu0 %vm235_vm1, %v643_v48 }
 0x977   :  { %1587 = vmatpush1.bf16.msra.mxu0 %v1839_v18  ;;  %812 = vmatprep.mubr.f32.mxu0 %v1780_v3 }
 0x978   :  { %1589 = vmatprep.subr.bf16.mxu0 %v1847_v21 }
 0x97b   :  { %1591 = vmatpush1.bf16.msra.mxu0 %v1868_v27 }
 0x97c   :  { %1593 = vmatprep.subr.bf16.mxu0 %v1877_v30 }
 0x97d   :  { %v1247_v13 = vld [vmem:[#allocation2 + $0x10] sm:$0xff] }
 0x97e   :  { %1476 = vmatmul.mubr.msk.f32.gmra.mrb[24].mxu1 %vm235_vm1, %v1247_v13 }
 0x97f   :  { %1595 = vmatpush1.bf16.msra.mxu0 %v1892_v34  ;;  %1478 = vmatprep.mubr.msk.f32.mxu1 %vm1783_vm2, %v1780_v3 }
 0x980   :  { %1597 = vmatprep.subr.bf16.mxu0 %v1902_v37 }
 0x983   :  { %1599 = vmatpush1.bf16.msra.mxu0 %v1911_v39 }
 0x984   :  { %1601 = vmatprep.subr.bf16.mxu0 %v1834_v16 }
 0xa49   :  { %v714_v14 = vpop.f32.mrb[4].mxu0 }
 0xa4a   :  { %v719_v19 = vadd.f32 %v714_v14, %v201_v60  ;;  %v716_v22 = vpop.f32.mrb[5].mxu0 }
 0xa4b   :  { %v720_v24 = vadd.f32 %v716_v22, %v203_v15 }
 0xa4d   :  { %1744 = vtanh.f32 %v720_v24 }
 0xa4e   :  { %1746 = vtanh.f32 %v719_v19 }
 0xa51   :  { %v1361_v25 = vpop.f32.mrb[24].mxu1 }
 0xa52   :  { %v1362_v26 = vadd.f32 %v1361_v25, %v2094_v7  ;;  %v1477_v28 = vpop.f32.mrb[25].mxu1 }
 0xa53   :  { %v213_v28 = vadd.f32 %v1982_v55, %v2022_v17 }
 0xa54   :  { %1397 = vst [vmem:[%s2308_s2 + $0x10] sm:$0xff] %v1362_v26 }
 0xa57   :  { %v1745_v29 = vpop.eup %1744 }
 0xa58   :  { %v724_v32 = vmul.f32 %v1745_v29, %v2009_v10  ;;  %v1747_v52 = vpop.eup %1746  ;;  %v215_v29 = vadd.f32 %v1984_v56, %v2004_v4 }
 0xa59   :  { %v723_v31 = vmul.f32 %v1747_v52, %v2026_v20 }
 0xa5a   :  { %v726_v51 = vadd.f32 %v724_v32, %v2011_v11 }
 0xa5b   :  { %v725_v33 = vadd.f32 %v723_v31, %v2029_v23 }
 0xa5c   :  { %729 = vrot.lane.b32.xlu1 %v726_v51, %s1781_s22 }
 0xa5d   :  { %v727_v35 = vmul.f32 %v725_v33, %v637_v9 }
 0xace   :  { %v730_v36 = vpop.permute.xlu1 %729 }
 0xacf   :  { %v732_v38 = vmul.f32 %v730_v36, %v725_v33 }
 0xad1   :  { %734 = vrot.lane.b32.xlu0 %v732_v38, %s1781_s22 }
 0xb43   :  { %v735_v40 = vpop.permute.xlu0 %734 }
 0xb44   :  { %v737_v41 = vadd.f32 %v735_v40, %v727_v35 }
 0xb46   :  { %1748 = vtanh.f32 %v737_v41 }
 0xb50   :  { %v1749_v42 = vpop.eup %1748 }
 0xb51   :  { %740 = vrot.lane.b32.xlu1 %v1749_v42, %s1781_s22 }
 0xbc3   :  { %v741_v43 = vpop.permute.xlu1 %740 }
 0xbc4   :  { %v743_v44 = vmul.f32 %v741_v43, %v726_v51 }
 0xbc6   :  { %744 = vst.msk [vmem:[#allocation2 + $0x18] sm:$0xff] %vm235_vm1, %v743_v44  ;;  %1422 = vmatmul.mubr.msk.f32.vlgmr.msra.gmra.mrb[6].mxu0 %vm235_vm1, %v743_v44 }
 0xbc7   :  { %1603 = vmatpush1.bf16.msra.mxu0 %v1839_v18  ;;  %912 = vmatprep.mubr.f32.mxu0 %v1780_v3 }
 0xbc8   :  { %1605 = vmatprep.subr.bf16.mxu0 %v1847_v21 }
 0xbcb   :  { %1607 = vmatpush1.bf16.msra.mxu0 %v1868_v27 }
 0xbcc   :  { %1609 = vmatprep.subr.bf16.mxu0 %v1877_v30 }
 0xbcd   :  { %v1248_v45 = vld [vmem:[#allocation2 + $0x18] sm:$0xff] }
 0xbce   :  { %1479 = vmatmul.mubr.msk.f32.gmra.mrb[26].mxu1 %vm235_vm1, %v1248_v45 }
 0xbcf   :  { %1611 = vmatpush1.bf16.msra.mxu0 %v1892_v34  ;;  %1481 = vmatprep.mubr.msk.f32.mxu1 %vm1783_vm2, %v1780_v3 }
 0xbd0   :  { %1613 = vmatprep.subr.bf16.mxu0 %v1902_v37 }
 0xbd3   :  { %1615 = vmatpush1.bf16.msra.mxu0 %v1911_v39 }
 0xbd4   :  { %1617 = vmatprep.subr.bf16.mxu0 %v1834_v16 }
 0xc99   :  { %v814_v50 = vpop.f32.mrb[6].mxu0 }
 0xc9a   :  { %v819_v57 = vadd.f32 %v814_v50, %v207_v46  ;;  %v816_v63 = vpop.f32.mrb[7].mxu0 }
 0xc9b   :  { %v820_v1 = vadd.f32 %v816_v63, %v209_v49 }
 0xc9d   :  { %1750 = vtanh.f32 %v820_v1 }
 0xc9e   :  { %1752 = vtanh.f32 %v819_v57 }
 0xca1   :  { %v1366_v5 = vpop.f32.mrb[26].mxu1 }
 0xca2   :  { %v1367_v6 = vadd.f32 %v1366_v5, %v2094_v7  ;;  %v1480_v8 = vpop.f32.mrb[27].mxu1  ;;  %v219_v5 = vadd.f32 %v1986_v58, %v2022_v17 }
 0xca4   :  { %1398 = vst [vmem:[%s2308_s2 + $0x18] sm:$0xff] %v1367_v6  ;;  %v221_v6 = vadd.f32 %v1988_v59, %v2004_v4 }
 0xca7   :  { %v1751_v9 = vpop.eup %1750 }
 0xca8   :  { %v824_v12 = vmul.f32 %v1751_v9, %v2009_v10  ;;  %v1753_v54 = vpop.eup %1752 }
 0xca9   :  { %v823_v47 = vmul.f32 %v1753_v54, %v2026_v20 }
 0xcaa   :  { %v826_v53 = vadd.f32 %v824_v12, %v2011_v11 }
 0xcab   :  { %v825_v48 = vadd.f32 %v823_v47, %v2029_v23 }
 0xcac   :  { %829 = vrot.lane.b32.xlu0 %v826_v53, %s1781_s22 }
 0xcad   :  { %v827_v15 = vmul.f32 %v825_v48, %v737_v41 }
 0xd1e   :  { %v830_v13 = vpop.permute.xlu0 %829 }
 0xd1f   :  { %v832_v60 = vmul.f32 %v830_v13, %v825_v48 }
 0xd21   :  { %834 = vrot.lane.b32.xlu1 %v832_v60, %s1781_s22 }
 0xd93   :  { %v835_v14 = vpop.permute.xlu1 %834 }
 0xd94   :  { %v837_v19 = vadd.f32 %v835_v14, %v827_v15 }
 0xd96   :  { %1754 = vtanh.f32 %v837_v19 }
 0xda0   :  { %v1755_v22 = vpop.eup %1754 }
 0xda1   :  { %840 = vrot.lane.b32.xlu0 %v1755_v22, %s1781_s22 }
 0xe13   :  { %v841_v24 = vpop.permute.xlu0 %840 }
 0xe14   :  { %v843_v25 = vmul.f32 %v841_v24, %v826_v53 }
 0xe16   :  { %844 = vst.msk [vmem:[#allocation2 + $0x20] sm:$0xff] %vm235_vm1, %v843_v25  ;;  %1423 = vmatmul.mubr.msk.f32.vlgmr.msra.gmra.mrb[8].mxu0 %vm235_vm1, %v843_v25 }
 0xe17   :  { %1619 = vmatpush1.bf16.msra.mxu0 %v1839_v18  ;;  %1012 = vmatprep.mubr.f32.mxu0 %v1780_v3 }
 0xe18   :  { %1621 = vmatprep.subr.bf16.mxu0 %v1847_v21 }
 0xe1b   :  { %1623 = vmatpush1.bf16.msra.mxu0 %v1868_v27 }
 0xe1c   :  { %1625 = vmatprep.subr.bf16.mxu0 %v1877_v30 }
 0xe1d   :  { %v1249_v26 = vld [vmem:[#allocation2 + $0x20] sm:$0xff] }
 0xe1e   :  { %1482 = vmatmul.mubr.msk.f32.gmra.mrb[28].mxu1 %vm235_vm1, %v1249_v26 }
 0xe1f   :  { %1627 = vmatpush1.bf16.msra.mxu0 %v1892_v34  ;;  %1484 = vmatprep.mubr.msk.f32.mxu1 %vm1783_vm2, %v1780_v3 }
 0xe20   :  { %1629 = vmatprep.subr.bf16.mxu0 %v1902_v37 }
 0xe23   :  { %1631 = vmatpush1.bf16.msra.mxu0 %v1911_v39 }
 0xe24   :  { %1633 = vmatprep.subr.bf16.mxu0 %v1834_v16 }
 0xee9   :  { %v914_v32 = vpop.f32.mrb[8].mxu0 }
 0xeea   :  { %v919_v51 = vadd.f32 %v914_v32, %v213_v28  ;;  %v916_v52 = vpop.f32.mrb[9].mxu0 }
 0xeeb   :  { %v920_v31 = vadd.f32 %v916_v52, %v215_v29 }
 0xeed   :  { %1756 = vtanh.f32 %v920_v31 }
 0xeee   :  { %1758 = vtanh.f32 %v919_v51 }
 0xef1   :  { %v1371_v33 = vpop.f32.mrb[28].mxu1 }
 0xef2   :  { %v1372_v36 = vadd.f32 %v1371_v33, %v2094_v7  ;;  %v1483_v38 = vpop.f32.mrb[29].mxu1 }
 0xef4   :  { %1399 = vst [vmem:[%s2308_s2 + $0x20] sm:$0xff] %v1372_v36 }
 0xef7   :  { %v1757_v35 = vpop.eup %1756 }
 0xef8   :  { %v924_v40 = vmul.f32 %v1757_v35, %v2009_v10  ;;  %v1759_v56 = vpop.eup %1758 }
 0xef9   :  { %v923_v41 = vmul.f32 %v1759_v56, %v2026_v20 }
 0xefa   :  { %v926_v55 = vadd.f32 %v924_v40, %v2011_v11 }
 0xefb   :  { %v925_v42 = vadd.f32 %v923_v41, %v2029_v23 }
 0xefc   :  { %929 = vrot.lane.b32.xlu1 %v926_v55, %s1781_s22 }
 0xefd   :  { %v927_v45 = vmul.f32 %v925_v42, %v837_v19 }
 0xf6e   :  { %v930_v43 = vpop.permute.xlu1 %929 }
 0xf6f   :  { %v932_v44 = vmul.f32 %v930_v43, %v925_v42 }
 0xf71   :  { %934 = vrot.lane.b32.xlu0 %v932_v44, %s1781_s22 }
 0xfe3   :  { %v935_v46 = vpop.permute.xlu0 %934 }
 0xfe4   :  { %v937_v49 = vadd.f32 %v935_v46, %v927_v45  ;;  %v231_v46 = vadd.f32 %v1997_v0, %v2022_v17 }
 0xfe6   :  { %1760 = vtanh.f32 %v937_v49 }
 0xff0   :  { %v1761_v50 = vpop.eup %1760 }
 0xff1   :  { %940 = vrot.lane.b32.xlu1 %v1761_v50, %s1781_s22 }
0x1063   :  { %v941_v57 = vpop.permute.xlu1 %940 }
0x1064   :  { %v943_v63 = vmul.f32 %v941_v57, %v926_v55 }
0x1066   :  { %944 = vst.msk [vmem:[#allocation2 + $0x28] sm:$0xff] %vm235_vm1, %v943_v63  ;;  %1424 = vmatmul.mubr.msk.f32.vlgmr.msra.gmra.mrb[10].mxu0 %vm235_vm1, %v943_v63 }
0x1067   :  { %1635 = vmatpush1.bf16.msra.mxu0 %v1839_v18  ;;  %1112 = vmatprep.mubr.f32.mxu0 %v1780_v3 }
0x1068   :  { %1637 = vmatprep.subr.bf16.mxu0 %v1847_v21 }
0x106b   :  { %1639 = vmatpush1.bf16.msra.mxu0 %v1868_v27 }
0x106c   :  { %1641 = vmatprep.subr.bf16.mxu0 %v1877_v30 }
0x106d   :  { %v1250_v1 = vld [vmem:[#allocation2 + $0x28] sm:$0xff] }
0x106e   :  { %1485 = vmatmul.mubr.msk.f32.gmra.mrb[30].mxu1 %vm235_vm1, %v1250_v1 }
0x106f   :  { %1643 = vmatpush1.bf16.msra.mxu0 %v1892_v34  ;;  %1487 = vmatprep.mubr.msk.f32.mxu1 %vm1783_vm2, %v1780_v3 }
0x1070   :  { %1645 = vmatprep.subr.bf16.mxu0 %v1902_v37 }
0x1073   :  { %1647 = vmatpush1.bf16.msra.mxu0 %v1911_v39 }
0x1074   :  { %1649 = vmatprep.subr.bf16.mxu0 %v1834_v16 }
0x1139   :  { %v1014_v8 = vpop.f32.mrb[10].mxu0 }
0x113a   :  { %v1019_v9 = vadd.f32 %v1014_v8, %v219_v5  ;;  %v1016_v12 = vpop.f32.mrb[11].mxu0 }
0x113b   :  { %v1020_v53 = vadd.f32 %v1016_v12, %v221_v6 }
0x113d   :  { %1762 = vtanh.f32 %v1020_v53 }
0x113e   :  { %1764 = vtanh.f32 %v1019_v9 }
0x1141   :  { %v1376_v54 = vpop.f32.mrb[30].mxu1 }
0x1142   :  { %v1377_v47 = vadd.f32 %v1376_v54, %v2094_v7  ;;  %v1486_v48 = vpop.f32.mrb[31].mxu1 }
0x1144   :  { %1400 = vst [vmem:[%s2308_s2 + $0x28] sm:$0xff] %v1377_v47 }
0x1147   :  { %v1763_v16 = vpop.eup %1762 }
0x1148   :  { %v1024_v13 = vmul.f32 %v1763_v16, %v2009_v10  ;;  %v1765_v59 = vpop.eup %1764 }
0x1149   :  { %v1023_v60 = vmul.f32 %v1765_v59, %v2026_v20 }
0x114a   :  { %v1026_v58 = vadd.f32 %v1024_v13, %v2011_v11 }
0x114b   :  { %v1025_v15 = vadd.f32 %v1023_v60, %v2029_v23 }
0x114c   :  { %1029 = vrot.lane.b32.xlu0 %v1026_v58, %s1781_s22 }
0x114d   :  { %v1027_v22 = vmul.f32 %v1025_v15, %v937_v49  ;;  %v233_v49 = vadd.f32 %v2002_v2, %v2004_v4 }
0x11be   :  { %v1030_v14 = vpop.permute.xlu0 %1029 }
0x11bf   :  { %v1032_v19 = vmul.f32 %v1030_v14, %v1025_v15 }
0x11c1   :  { %1034 = vrot.lane.b32.xlu1 %v1032_v19, %s1781_s22 }
0x1233   :  { %v1035_v24 = vpop.permute.xlu1 %1034 }
0x1234   :  { %v1037_v25 = vadd.f32 %v1035_v24, %v1027_v22 }
0x1236   :  { %1766 = vtanh.f32 %v1037_v25 }
0x1240   :  { %v1767_v26 = vpop.eup %1766 }
0x1241   :  { %1040 = vrot.lane.b32.xlu0 %v1767_v26, %s1781_s22 }
0x12b3   :  { %v1041_v28 = vpop.permute.xlu0 %1040 }
0x12b4   :  { %v1043_v29 = vmul.f32 %v1041_v28, %v1026_v58 }
0x12b6   :  { %1044 = vst.msk [vmem:[#allocation2 + $0x30] sm:$0xff] %vm235_vm1, %v1043_v29  ;;  %1425 = vmatmul.mubr.msk.f32.vlgmr.msra.gmra.mrb[12].mxu0 %vm235_vm1, %v1043_v29 }
0x12b7   :  { %1651 = vmatpush1.bf16.msra.mxu0 %v1839_v18  ;;  %1212 = vmatprep.mubr.f32.mxu0 %v1780_v3  ;;  %v225_v18 = vadd.f32 %v1992_v61, %v2022_v17 }
0x12b8   :  { %1653 = vmatprep.subr.bf16.mxu0 %v1847_v21  ;;  %v227_v21 = vadd.f32 %v1994_v62, %v2004_v4 }
0x12bb   :  { %1655 = vmatpush1.bf16.msra.mxu0 %v1868_v27 }
0x12bc   :  { %1657 = vmatprep.subr.bf16.mxu0 %v1877_v30 }
0x12bd   :  { %v1251_v32 = vld [vmem:[#allocation2 + $0x30] sm:$0xff] }
0x12be   :  { %1488 = vmatmul.mubr.msk.f32.gmra.mrb[32].mxu1 %vm235_vm1, %v1251_v32 }
0x12bf   :  { %1659 = vmatpush1.bf16.msra.mxu0 %v1892_v34  ;;  %1490 = vmatprep.mubr.msk.f32.mxu1 %vm1783_vm2, %v1780_v3 }
0x12c0   :  { %1661 = vmatprep.subr.bf16.mxu0 %v1902_v37 }
0x12c3   :  { %1663 = vmatpush1.bf16.msra.mxu0 %v1911_v39 }
0x1389   :  { %v1114_v27 = vpop.f32.mrb[12].mxu0 }
0x138a   :  { %v1119_v30 = vadd.f32 %v1114_v27, %v225_v18  ;;  %v1116_v51 = vpop.f32.mrb[13].mxu0 }
0x138b   :  { %v1120_v52 = vadd.f32 %v1116_v51, %v227_v21 }
0x138d   :  { %1768 = vtanh.f32 %v1120_v52 }
0x138e   :  { %1770 = vtanh.f32 %v1119_v30 }
0x1391   :  { %v1381_v31 = vpop.f32.mrb[32].mxu1 }
0x1392   :  { %v1382_v34 = vadd.f32 %v1381_v31, %v2094_v7  ;;  %v1489_v33 = vpop.f32.mrb[33].mxu1 }
0x1394   :  { %1401 = vst [vmem:[%s2308_s2 + $0x30] sm:$0xff] %v1382_v34 }
0x1397   :  { %v1769_v37 = vpop.eup %1768 }
0x1398   :  { %v1124_v39 = vmul.f32 %v1769_v37, %v2009_v10  ;;  %v1771_v62 = vpop.eup %1770 }
0x1399   :  { %v1123_v36 = vmul.f32 %v1771_v62, %v2026_v20 }
0x139a   :  { %v1126_v61 = vadd.f32 %v1124_v39, %v2011_v11 }
0x139b   :  { %v1125_v38 = vadd.f32 %v1123_v36, %v2029_v23 }
0x139c   :  { %1129 = vrot.lane.b32.xlu1 %v1126_v61, %s1781_s22 }
0x139d   :  { %v1127_v55 = vmul.f32 %v1125_v38, %v1037_v25 }
0x140e   :  { %v1130_v35 = vpop.permute.xlu1 %1129 }
0x140f   :  { %v1132_v40 = vmul.f32 %v1130_v35, %v1125_v38 }
0x1411   :  { %1134 = vrot.lane.b32.xlu0 %v1132_v40, %s1781_s22 }
0x1483   :  { %v1135_v56 = vpop.permute.xlu0 %1134 }
0x1484   :  { %v1137_v41 = vadd.f32 %v1135_v56, %v1127_v55 }
0x1486   :  { %1772 = vtanh.f32 %v1137_v41 }
0x1490   :  { %v1773_v42 = vpop.eup %1772 }
0x1491   :  { %1140 = vrot.lane.b32.xlu1 %v1773_v42, %s1781_s22 }
0x1503   :  { %v1141_v43 = vpop.permute.xlu1 %1140 }
0x1504   :  { %v1143_v44 = vmul.f32 %v1141_v43, %v1126_v61 }
0x1506   :  { %1144 = vst.msk [vmem:[#allocation2 + $0x38] sm:$0xff] %vm235_vm1, %v1143_v44  ;;  %1426 = vmatmul.mubr.msk.f32.vlgmr.msra.gmra.mrb[14].mxu0 %vm235_vm1, %v1143_v44 }
0x150d   :  { %v1252_v45 = vld [vmem:[#allocation2 + $0x38] sm:$0xff] }
0x150e   :  { %1491 = vmatmul.mubr.msk.f32.gmra.mrb[34].mxu1 %vm235_vm1, %v1252_v45 }
0x150f   :  { %1493 = vmatprep.mubr.msk.f32.mxu1 %vm1783_vm2, %v1780_v3 }
0x15d9   :  { %v1214_v50 = vpop.f32.mrb[14].mxu0 }
0x15da   :  { %v1219_v57 = vadd.f32 %v1214_v50, %v231_v46  ;;  %v1216_v63 = vpop.f32.mrb[15].mxu0 }
0x15db   :  { %v1220_v1 = vadd.f32 %v1216_v63, %v233_v49 }
0x15dd   :  { %1774 = vtanh.f32 %v1220_v1 }
0x15de   :  { %1776 = vtanh.f32 %v1219_v57 }
0x15e1   :  { %v1386_v5 = vpop.f32.mrb[34].mxu1 }
0x15e2   :  { %v1387_v6 = vadd.f32 %v1386_v5, %v2094_v7  ;;  %v1492_v8 = vpop.f32.mrb[35].mxu1 }
0x15e4   :  { %1402 = vst [vmem:[%s2308_s2 + $0x38] sm:$0xff] %v1387_v6 }
0x15e7   :  { %v1775_v3 = vpop.eup %1774 }
0x15e8   :  { %v1224_v9 = vmul.f32 %v1775_v3, %v2009_v10  ;;  %v1777_v2 = vpop.eup %1776 }
0x15e9   :  { %v1223_v4 = vmul.f32 %v1777_v2, %v2026_v20 }
0x15ea   :  { %v1226_v0 = vadd.f32 %v1224_v9, %v2011_v11 }
0x15eb   :  { %v1225_v17 = vadd.f32 %v1223_v4, %v2029_v23 }
0x15ec   :  { %1229 = vrot.lane.b32.xlu0 %v1226_v0, %s1781_s22 }
0x15ed   :  { %v1227_v54 = vmul.f32 %v1225_v17, %v1137_v41 }
0x165e   :  { %v1230_v12 = vpop.permute.xlu0 %1229 }
0x165f   :  { %v1232_v53 = vmul.f32 %v1230_v12, %v1225_v17 }
0x1661   :  { %1234 = vrot.lane.b32.xlu1 %v1232_v53, %s1781_s22 }
0x16d3   :  { %v1235_v47 = vpop.permute.xlu1 %1234 }
0x16d4   :  { %v1237_v48 = vadd.f32 %v1235_v47, %v1227_v54 }
0x16d6   :  { %1778 = vtanh.f32 %v1237_v48 }
0x16e0   :  { %v1779_v16 = vpop.eup %1778 }
0x16e1   :  { %1240 = vrot.lane.b32.xlu0 %v1779_v16, %s1781_s22 }
0x1753   :  { %v1241_v10 = vpop.permute.xlu0 %1240 }
0x1754   :  { %v1243_v11 = vmul.f32 %v1241_v10, %v1226_v0 }
0x1756   :  { %1244 = vst.msk [vmem:[#allocation2 + $0x40] sm:$0xff] %vm235_vm1, %v1243_v11 }
0x175d   :  { %v1253_v13 = vld [vmem:[#allocation2 + $0x40] sm:$0xff] }
0x175e   :  { %1494 = vmatmul.mubr.msk.f32.gmra.mrb[36].mxu1 %vm235_vm1, %v1253_v13 }
0x1831   :  { %v1391_v20 = vpop.f32.mrb[36].mxu1 }
0x1832   :  { %v1392_v23 = vadd.f32 %v1391_v20, %v2094_v7  ;;  %v1495_v58 = vpop.f32.mrb[37].mxu1 }
0x1834   :  { %1403 = vst [vmem:[%s2308_s2 + $0x40] sm:$0xff] %v1392_v23 }

</bundles_post_ra>
